<compile_context>
chip_gen: v5e
topology: v5e:2x2
jax: 0.10.0
libtpu: 0.0.40
codegen_flags: <defaults>
</compile_context>

<pallas_src>
import math
import jax
import jax.numpy as jnp
from jax.experimental import pallas as pl
from jax.experimental.pallas import tpu as pltpu

# ---- small T5-ish config -----------------------------------------------------
D_MODEL = 32
D_KV = 8
N_HEADS = 4
INNER = N_HEADS * D_KV          # 32
NUM_BUCKETS = 32
MAX_DISTANCE = 128
LN_EPS = 1e-6
BATCH = 2
SEQ = 8
# TODO(synk): dropout (attention-probs and residual) omitted — module is run in eval mode.


# ---- Pallas kernel: layernorm + fused QKV + attention + out proj + residual --
def _self_attn_kernel(h_ref, lnw_ref, wqkv_ref, wo_ref, bias_ref, out_ref):
    """One grid step == one batch example.

    h_ref    : (1, S, D)       hidden states for this example
    lnw_ref  : (1, D)          RMS-LayerNorm weight
    wqkv_ref : (D, 3*INNER)    fused [Wq | Wk | Wv]  (already (in, out) layout)
    wo_ref   : (INNER, D)      Wo^T
    bias_ref : (H, S, S)       relative position bias (shared across batch)
    out_ref  : (1, S, D)
    """
    x = h_ref[0].astype(jnp.float32)                             # (S, D)

    # SparseT5LayerNorm: variance in fp32, no mean subtraction, no bias.
    var = jnp.mean(x * x, axis=-1, keepdims=True)
    normed = lnw_ref[...] * (x * jax.lax.rsqrt(var + LN_EPS))    # (S, D)

    # One fused MXU push for all three bias-free projections.
    qkv = jnp.dot(normed, wqkv_ref[...],
                  preferred_element_type=jnp.float32)            # (S, 3*INNER)

    # Per-head attention, loop fully unrolled (static Python for).
    ctx_heads = []
    for h in range(N_HEADS):
        lo = h * D_KV
        q_h = qkv[:, 0 * INNER + lo:0 * INNER + lo + D_KV]       # (S, D_KV)
        k_h = qkv[:, 1 * INNER + lo:1 * INNER + lo + D_KV]       # (S, D_KV)
        v_h = qkv[:, 2 * INNER + lo:2 * INNER + lo + D_KV]       # (S, D_KV)

        # scores = q @ k^T done as a (1,1)-contraction: MXU consumes K
        # natively transposed — no XLU transpose on the critical path.
        s = jax.lax.dot_general(
            q_h, k_h, (((1,), (1,)), ((), ())),
            preferred_element_type=jnp.float32) + bias_ref[h]    # (S, S)

        # fp32 softmax (exact divide: EUP/VPU have plenty of slack here).
        m = jnp.max(s, axis=-1, keepdims=True)
        e = jnp.exp(s - m)
        p = e / jnp.sum(e, axis=-1, keepdims=True)

        ctx_heads.append(jnp.dot(p, v_h,
                                 preferred_element_type=jnp.float32))  # (S, D_KV)

    # Single output projection: concat heads once, one (S,INNER)@(INNER,D) matmul.
    ctx = jnp.concatenate(ctx_heads, axis=-1)                    # (S, INNER)
    proj = jnp.dot(ctx, wo_ref[...], preferred_element_type=jnp.float32)  # (S, D)

    # Residual connection.
    out_ref[0] = (x + proj).astype(out_ref.dtype)


def sparse_t5_layer_self_attention(hidden_states, params, position_bias):
    B, S, D = hidden_states.shape

    # Fuse Q/K/V weights wrapper-side: one (D, 3*INNER) matmul in the kernel.
    w_qkv = jnp.concatenate([params["wq_t"], params["wk_t"], params["wv_t"]], axis=1)

    pb = position_bias[0]                                        # (H, S, S)

    out = pl.pallas_call(
        _self_attn_kernel,
        out_shape=jax.ShapeDtypeStruct((B, S, D), hidden_states.dtype),
        grid=(B,),                                               # one step per example
        in_specs=[
            pl.BlockSpec((1, S, D), lambda b: (b, 0, 0)),        # hidden (per batch)
            pl.BlockSpec((1, D), lambda b: (0, 0)),              # layernorm weight
            pl.BlockSpec((D, 3 * INNER), lambda b: (0, 0)),      # fused Wqkv^T (resident)
            pl.BlockSpec((INNER, D), lambda b: (0, 0)),          # Wo^T (resident)
            pl.BlockSpec((N_HEADS, S, S), lambda b: (0, 0, 0)),  # position bias (resident)
        ],
        out_specs=pl.BlockSpec((1, S, D), lambda b: (b, 0, 0)),
        # Batch axis is independent -> "parallel" (sharded across TCs on v7x).
        compiler_params=pltpu.CompilerParams(dimension_semantics=("parallel",)),
    )(hidden_states, params["ln_w"].reshape(1, D), w_qkv, params["wo_t"], pb)

    # Matches module output tuple: (hidden, present_key_value_state, position_bias)
    return out, None, position_bias


# ---- plain-JAX glue: T5 relative position bias (parameter/setup code) --------
def _relative_position_bucket(rel_pos, bidirectional=True, num_buckets=32, max_distance=128):
    relative_buckets = jnp.zeros_like(rel_pos)
    if bidirectional:
        num_buckets //= 2
        relative_buckets = relative_buckets + (rel_pos > 0).astype(jnp.int32) * num_buckets
        rel_pos = jnp.abs(rel_pos)
    else:
        rel_pos = -jnp.minimum(rel_pos, 0)
    max_exact = num_buckets // 2
    is_small = rel_pos < max_exact
    rel_if_large = max_exact + (
        jnp.log(rel_pos.astype(jnp.float32) / max_exact)
        / math.log(max_distance / max_exact) * (num_buckets - max_exact)
    ).astype(jnp.int32)
    rel_if_large = jnp.minimum(rel_if_large, num_buckets - 1)
    return relative_buckets + jnp.where(is_small, rel_pos, rel_if_large)


def compute_position_bias(rel_emb, q_len, k_len):
    ctx = jnp.arange(q_len, dtype=jnp.int32)[:, None]
    mem = jnp.arange(k_len, dtype=jnp.int32)[None, :]
    rel = mem - ctx
    bucket = _relative_position_bucket(rel, bidirectional=True,
                                       num_buckets=NUM_BUCKETS, max_distance=MAX_DISTANCE)
    values = rel_emb[bucket]                                     # (q, k, H)
    return jnp.transpose(values, (2, 0, 1))[None]                # (1, H, q, k)


# ---- pure-JAX reference for verification -------------------------------------
def _reference(hidden, params, position_bias):
    x = hidden.astype(jnp.float32)
    var = jnp.mean(x * x, axis=-1, keepdims=True)
    normed = params["ln_w"] * (x * jax.lax.rsqrt(var + LN_EPS))
    B, S, D = hidden.shape
    q = (normed @ params["wq_t"]).reshape(B, S, N_HEADS, D_KV).transpose(0, 2, 1, 3)
    k = (normed @ params["wk_t"]).reshape(B, S, N_HEADS, D_KV).transpose(0, 2, 1, 3)
    v = (normed @ params["wv_t"]).reshape(B, S, N_HEADS, D_KV).transpose(0, 2, 1, 3)
    scores = jnp.einsum("bhqd,bhkd->bhqk", q, k) + position_bias
    p = jax.nn.softmax(scores.astype(jnp.float32), axis=-1)
    o = jnp.einsum("bhqk,bhkd->bhqd", p, v).transpose(0, 2, 1, 3).reshape(B, S, INNER)
    return hidden + o @ params["wo_t"]


if __name__ == "__main__":
    key = jax.random.PRNGKey(0)
    kh, kq, kk, kv, ko, ke = jax.random.split(key, 6)

    hidden = jax.random.normal(kh, (BATCH, SEQ, D_MODEL), jnp.float32)

    # Deterministic "synthetic checkpoint": nn.Linear weights (out, in), stored transposed.
    params = {
        "ln_w": jnp.ones((D_MODEL,), jnp.float32),
        "wq_t": (0.05 * jax.random.normal(kq, (INNER, D_MODEL), jnp.float32)).T,
        "wk_t": (0.05 * jax.random.normal(kk, (INNER, D_MODEL), jnp.float32)).T,
        "wv_t": (0.05 * jax.random.normal(kv, (INNER, D_MODEL), jnp.float32)).T,
        "wo_t": (0.05 * jax.random.normal(ko, (D_MODEL, INNER), jnp.float32)).T,
        "rel_emb": 0.05 * jax.random.normal(ke, (NUM_BUCKETS, N_HEADS), jnp.float32),
    }

    position_bias = compute_position_bias(params["rel_emb"], SEQ, SEQ)   # (1, H, S, S)

    out, present_kv, pos_bias_out = sparse_t5_layer_self_attention(hidden, params, position_bias)
    out = jax.block_until_ready(out)

    ref = _reference(hidden, params, position_bias)
    assert out.shape == (BATCH, SEQ, D_MODEL)
    # Tolerance covers MXU f32 multi-pass matmul vs. XLA reference precision.
    assert jnp.allclose(out, ref, atol=2e-3, rtol=2e-3), "mismatch vs JAX reference"
    print("KERNEL_OK")
</pallas_src>

<mosaic_0001>
module attributes {stable_mosaic.version = 11 : i64} {
  func.func @_self_attn_kernel(%arg0: i32, %arg1: memref<1x8x32xf32, #tpu.memory_space<vmem>>, %arg2: memref<1x32xf32, #tpu.memory_space<vmem>>, %arg3: memref<32x96xf32, #tpu.memory_space<vmem>>, %arg4: memref<32x32xf32, #tpu.memory_space<vmem>>, %arg5: memref<4x8x8xf32, #tpu.memory_space<vmem>>, %arg6: memref<1x8x32xf32, #tpu.memory_space<vmem>>) attributes {dimension_semantics = [#tpu.dimension_semantics<parallel>], iteration_bounds = array<i64: 2>, scalar_prefetch = 0 : i64, scratch_operands = 0 : i64, tpu.core_type = #tpu.core_type<tc>, window_params = [{transform_indices = @transform_0, window_bounds = array<i64: 1, 8, 32>}, {pipeline_mode = #tpu.pipeline_mode<synchronous>, transform_indices = @transform_1, window_bounds = array<i64: 1, 32>}, {pipeline_mode = #tpu.pipeline_mode<synchronous>, transform_indices = @transform_2, window_bounds = array<i64: 32, 96>}, {pipeline_mode = #tpu.pipeline_mode<synchronous>, transform_indices = @transform_3, window_bounds = array<i64: 32, 32>}, {pipeline_mode = #tpu.pipeline_mode<synchronous>, transform_indices = @transform_4, window_bounds = array<i64: 4, 8, 8>}, {transform_indices = @transform_5, window_bounds = array<i64: 1, 8, 32>}]} {
    %c0 = arith.constant 0 : index
    %c0_0 = arith.constant 0 : index
    %c0_1 = arith.constant 0 : index
    %0 = vector.load %arg1[%c0, %c0_0, %c0_1] : memref<1x8x32xf32, #tpu.memory_space<vmem>>, vector<1x8x32xf32>
    %1 = vector.shape_cast %0 : vector<1x8x32xf32> to vector<8x32xf32>
    %2 = arith.mulf %1, %1 : vector<8x32xf32>
    %cst = arith.constant dense<0.000000e+00> : vector<8xf32>
    %3 = vector.multi_reduction <add>, %2, %cst [1] : vector<8x32xf32> to vector<8xf32>
    %4 = vector.shape_cast %3 : vector<8xf32> to vector<8x1xf32>
    %cst_2 = arith.constant 3.200000e+01 : f32
    %5 = vector.broadcast %cst_2 : f32 to vector<8x1xf32>
    %6 = arith.divf %4, %5 : vector<8x1xf32>
    %c0_3 = arith.constant 0 : index
    %c0_4 = arith.constant 0 : index
    %7 = vector.load %arg2[%c0_3, %c0_4] : memref<1x32xf32, #tpu.memory_space<vmem>>, vector<1x32xf32>
    %cst_5 = arith.constant 9.99999997E-7 : f32
    %8 = vector.broadcast %cst_5 : f32 to vector<8x1xf32>
    %9 = arith.addf %6, %8 : vector<8x1xf32>
    %10 = math.rsqrt %9 : vector<8x1xf32>
    %11 = vector.broadcast %10 : vector<8x1xf32> to vector<8x32xf32>
    %12 = arith.mulf %1, %11 : vector<8x32xf32>
    %13 = vector.broadcast %7 : vector<1x32xf32> to vector<8x32xf32>
    %14 = arith.mulf %13, %12 : vector<8x32xf32>
    %c0_6 = arith.constant 0 : index
    %c0_7 = arith.constant 0 : index
    %15 = vector.load %arg3[%c0_6, %c0_7] : memref<32x96xf32, #tpu.memory_space<vmem>>, vector<32x96xf32>
    %cst_8 = arith.constant dense<0.000000e+00> : vector<8x96xf32>
    %16 = tpu.matmul %14, %15, %cst_8 {dimension_numbers = #tpu.dot_dimension_numbers<[1], [0], [0], [1], [0, 0, 1, 1], [], []>} : vector<8x32xf32>, vector<32x96xf32>, vector<8x96xf32> -> vector<8x96xf32>
    %17 = vector.extract_strided_slice %16 {offsets = [0, 0], sizes = [8, 8], strides = [1, 1]} : vector<8x96xf32> to vector<8x8xf32>
    %18 = vector.extract_strided_slice %16 {offsets = [0, 32], sizes = [8, 8], strides = [1, 1]} : vector<8x96xf32> to vector<8x8xf32>
    %19 = vector.extract_strided_slice %16 {offsets = [0, 64], sizes = [8, 8], strides = [1, 1]} : vector<8x96xf32> to vector<8x8xf32>
    %cst_9 = arith.constant dense<0.000000e+00> : vector<8x8xf32>
    %20 = tpu.matmul %17, %18, %cst_9 {dimension_numbers = #tpu.dot_dimension_numbers<[1], [1], [0], [0], [0, 0, 1, 0], [], []>} : vector<8x8xf32>, vector<8x8xf32>, vector<8x8xf32> -> vector<8x8xf32>
    %c0_10 = arith.constant 0 : index
    %c0_11 = arith.constant 0 : index
    %c0_12 = arith.constant 0 : index
    %21 = vector.load %arg5[%c0_10, %c0_11, %c0_12] : memref<4x8x8xf32, #tpu.memory_space<vmem>>, vector<1x8x8xf32>
    %22 = vector.shape_cast %21 : vector<1x8x8xf32> to vector<8x8xf32>
    %23 = arith.addf %20, %22 : vector<8x8xf32>
    %cst_13 = arith.constant dense<0xFF800000> : vector<8xf32>
    %24 = vector.multi_reduction <maximumf>, %23, %cst_13 [1] : vector<8x8xf32> to vector<8xf32>
    %25 = vector.shape_cast %24 : vector<8xf32> to vector<8x1xf32>
    %26 = vector.broadcast %25 : vector<8x1xf32> to vector<8x8xf32>
    %27 = arith.subf %23, %26 : vector<8x8xf32>
    %28 = math.exp %27 : vector<8x8xf32>
    %cst_14 = arith.constant dense<0.000000e+00> : vector<8xf32>
    %29 = vector.multi_reduction <add>, %28, %cst_14 [1] : vector<8x8xf32> to vector<8xf32>
    %30 = vector.shape_cast %29 : vector<8xf32> to vector<8x1xf32>
    %31 = vector.broadcast %30 : vector<8x1xf32> to vector<8x8xf32>
    %32 = arith.divf %28, %31 : vector<8x8xf32>
    %cst_15 = arith.constant dense<0.000000e+00> : vector<8x8xf32>
    %33 = tpu.matmul %32, %19, %cst_15 {dimension_numbers = #tpu.dot_dimension_numbers<[1], [0], [0], [1], [0, 0, 1, 1], [], []>} : vector<8x8xf32>, vector<8x8xf32>, vector<8x8xf32> -> vector<8x8xf32>
    %34 = vector.extract_strided_slice %16 {offsets = [0, 8], sizes = [8, 8], strides = [1, 1]} : vector<8x96xf32> to vector<8x8xf32>
    %35 = vector.extract_strided_slice %16 {offsets = [0, 40], sizes = [8, 8], strides = [1, 1]} : vector<8x96xf32> to vector<8x8xf32>
    %36 = vector.extract_strided_slice %16 {offsets = [0, 72], sizes = [8, 8], strides = [1, 1]} : vector<8x96xf32> to vector<8x8xf32>
    %cst_16 = arith.constant dense<0.000000e+00> : vector<8x8xf32>
    %37 = tpu.matmul %34, %35, %cst_16 {dimension_numbers = #tpu.dot_dimension_numbers<[1], [1], [0], [0], [0, 0, 1, 0], [], []>} : vector<8x8xf32>, vector<8x8xf32>, vector<8x8xf32> -> vector<8x8xf32>
    %c1 = arith.constant 1 : index
    %c0_17 = arith.constant 0 : index
    %c0_18 = arith.constant 0 : index
    %38 = vector.load %arg5[%c1, %c0_17, %c0_18] : memref<4x8x8xf32, #tpu.memory_space<vmem>>, vector<1x8x8xf32>
    %39 = vector.shape_cast %38 : vector<1x8x8xf32> to vector<8x8xf32>
    %40 = arith.addf %37, %39 : vector<8x8xf32>
    %cst_19 = arith.constant dense<0xFF800000> : vector<8xf32>
    %41 = vector.multi_reduction <maximumf>, %40, %cst_19 [1] : vector<8x8xf32> to vector<8xf32>
    %42 = vector.shape_cast %41 : vector<8xf32> to vector<8x1xf32>
    %43 = vector.broadcast %42 : vector<8x1xf32> to vector<8x8xf32>
    %44 = arith.subf %40, %43 : vector<8x8xf32>
    %45 = math.exp %44 : vector<8x8xf32>
    %cst_20 = arith.constant dense<0.000000e+00> : vector<8xf32>
    %46 = vector.multi_reduction <add>, %45, %cst_20 [1] : vector<8x8xf32> to vector<8xf32>
    %47 = vector.shape_cast %46 : vector<8xf32> to vector<8x1xf32>
    %48 = vector.broadcast %47 : vector<8x1xf32> to vector<8x8xf32>
    %49 = arith.divf %45, %48 : vector<8x8xf32>
    %cst_21 = arith.constant dense<0.000000e+00> : vector<8x8xf32>
    %50 = tpu.matmul %49, %36, %cst_21 {dimension_numbers = #tpu.dot_dimension_numbers<[1], [0], [0], [1], [0, 0, 1, 1], [], []>} : vector<8x8xf32>, vector<8x8xf32>, vector<8x8xf32> -> vector<8x8xf32>
    %51 = vector.extract_strided_slice %16 {offsets = [0, 16], sizes = [8, 8], strides = [1, 1]} : vector<8x96xf32> to vector<8x8xf32>
    %52 = vector.extract_strided_slice %16 {offsets = [0, 48], sizes = [8, 8], strides = [1, 1]} : vector<8x96xf32> to vector<8x8xf32>
    %53 = vector.extract_strided_slice %16 {offsets = [0, 80], sizes = [8, 8], strides = [1, 1]} : vector<8x96xf32> to vector<8x8xf32>
    %cst_22 = arith.constant dense<0.000000e+00> : vector<8x8xf32>
    %54 = tpu.matmul %51, %52, %cst_22 {dimension_numbers = #tpu.dot_dimension_numbers<[1], [1], [0], [0], [0, 0, 1, 0], [], []>} : vector<8x8xf32>, vector<8x8xf32>, vector<8x8xf32> -> vector<8x8xf32>
    %c2 = arith.constant 2 : index
    %c0_23 = arith.constant 0 : index
    %c0_24 = arith.constant 0 : index
    %55 = vector.load %arg5[%c2, %c0_23, %c0_24] : memref<4x8x8xf32, #tpu.memory_space<vmem>>, vector<1x8x8xf32>
    %56 = vector.shape_cast %55 : vector<1x8x8xf32> to vector<8x8xf32>
    %57 = arith.addf %54, %56 : vector<8x8xf32>
    %cst_25 = arith.constant dense<0xFF800000> : vector<8xf32>
    %58 = vector.multi_reduction <maximumf>, %57, %cst_25 [1] : vector<8x8xf32> to vector<8xf32>
    %59 = vector.shape_cast %58 : vector<8xf32> to vector<8x1xf32>
    %60 = vector.broadcast %59 : vector<8x1xf32> to vector<8x8xf32>
    %61 = arith.subf %57, %60 : vector<8x8xf32>
    %62 = math.exp %61 : vector<8x8xf32>
    %cst_26 = arith.constant dense<0.000000e+00> : vector<8xf32>
    %63 = vector.multi_reduction <add>, %62, %cst_26 [1] : vector<8x8xf32> to vector<8xf32>
    %64 = vector.shape_cast %63 : vector<8xf32> to vector<8x1xf32>
    %65 = vector.broadcast %64 : vector<8x1xf32> to vector<8x8xf32>
    %66 = arith.divf %62, %65 : vector<8x8xf32>
    %cst_27 = arith.constant dense<0.000000e+00> : vector<8x8xf32>
    %67 = tpu.matmul %66, %53, %cst_27 {dimension_numbers = #tpu.dot_dimension_numbers<[1], [0], [0], [1], [0, 0, 1, 1], [], []>} : vector<8x8xf32>, vector<8x8xf32>, vector<8x8xf32> -> vector<8x8xf32>
    %68 = vector.extract_strided_slice %16 {offsets = [0, 24], sizes = [8, 8], strides = [1, 1]} : vector<8x96xf32> to vector<8x8xf32>
    %69 = vector.extract_strided_slice %16 {offsets = [0, 56], sizes = [8, 8], strides = [1, 1]} : vector<8x96xf32> to vector<8x8xf32>
    %70 = vector.extract_strided_slice %16 {offsets = [0, 88], sizes = [8, 8], strides = [1, 1]} : vector<8x96xf32> to vector<8x8xf32>
    %cst_28 = arith.constant dense<0.000000e+00> : vector<8x8xf32>
    %71 = tpu.matmul %68, %69, %cst_28 {dimension_numbers = #tpu.dot_dimension_numbers<[1], [1], [0], [0], [0, 0, 1, 0], [], []>} : vector<8x8xf32>, vector<8x8xf32>, vector<8x8xf32> -> vector<8x8xf32>
    %c3 = arith.constant 3 : index
    %c0_29 = arith.constant 0 : index
    %c0_30 = arith.constant 0 : index
    %72 = vector.load %arg5[%c3, %c0_29, %c0_30] : memref<4x8x8xf32, #tpu.memory_space<vmem>>, vector<1x8x8xf32>
    %73 = vector.shape_cast %72 : vector<1x8x8xf32> to vector<8x8xf32>
    %74 = arith.addf %71, %73 : vector<8x8xf32>
    %cst_31 = arith.constant dense<0xFF800000> : vector<8xf32>
    %75 = vector.multi_reduction <maximumf>, %74, %cst_31 [1] : vector<8x8xf32> to vector<8xf32>
    %76 = vector.shape_cast %75 : vector<8xf32> to vector<8x1xf32>
    %77 = vector.broadcast %76 : vector<8x1xf32> to vector<8x8xf32>
    %78 = arith.subf %74, %77 : vector<8x8xf32>
    %79 = math.exp %78 : vector<8x8xf32>
    %cst_32 = arith.constant dense<0.000000e+00> : vector<8xf32>
    %80 = vector.multi_reduction <add>, %79, %cst_32 [1] : vector<8x8xf32> to vector<8xf32>
    %81 = vector.shape_cast %80 : vector<8xf32> to vector<8x1xf32>
    %82 = vector.broadcast %81 : vector<8x1xf32> to vector<8x8xf32>
    %83 = arith.divf %79, %82 : vector<8x8xf32>
    %cst_33 = arith.constant dense<0.000000e+00> : vector<8x8xf32>
    %84 = tpu.matmul %83, %70, %cst_33 {dimension_numbers = #tpu.dot_dimension_numbers<[1], [0], [0], [1], [0, 0, 1, 1], [], []>} : vector<8x8xf32>, vector<8x8xf32>, vector<8x8xf32> -> vector<8x8xf32>
    %85 = tpu.concatenate %33, %50, %67, %84 in 1 : vector<8x8xf32>, vector<8x8xf32>, vector<8x8xf32>, vector<8x8xf32> -> vector<8x32xf32>
    %c0_34 = arith.constant 0 : index
    %c0_35 = arith.constant 0 : index
    %86 = vector.load %arg4[%c0_34, %c0_35] : memref<32x32xf32, #tpu.memory_space<vmem>>, vector<32x32xf32>
    %cst_36 = arith.constant dense<0.000000e+00> : vector<8x32xf32>
    %87 = tpu.matmul %85, %86, %cst_36 {dimension_numbers = #tpu.dot_dimension_numbers<[1], [0], [0], [1], [0, 0, 1, 1], [], []>} : vector<8x32xf32>, vector<32x32xf32>, vector<8x32xf32> -> vector<8x32xf32>
    %88 = arith.addf %1, %87 : vector<8x32xf32>
    %c0_37 = arith.constant 0 : index
    %c0_38 = arith.constant 0 : index
    %c0_39 = arith.constant 0 : index
    %89 = vector.load %arg6[%c0_37, %c0_38, %c0_39] : memref<1x8x32xf32, #tpu.memory_space<vmem>>, vector<1x8x32xf32>
    %90 = vector.shape_cast %89 : vector<1x8x32xf32> to vector<8x32xf32>
    %91 = vector.shape_cast %88 : vector<8x32xf32> to vector<1x8x32xf32>
    tpu.vector_store %arg6[%c0_37, %c0_38, %c0_39], %91 {strides = array<i32>} : memref<1x8x32xf32, #tpu.memory_space<vmem>>, vector<1x8x32xf32>,
    return
  }
  func.func @transform_0(%arg0: i32) -> (i32, i32, i32) {
    %c0_i32 = arith.constant 0 : i32
    %c0_i32_0 = arith.constant 0 : i32
    %c0_i32_1 = arith.constant 0 : i32
    return %arg0, %c0_i32, %c0_i32_0 : i32, i32, i32
  }
  func.func @transform_1(%arg0: i32) -> (i32, i32) {
    %c0_i32 = arith.constant 0 : i32
    %c0_i32_0 = arith.constant 0 : i32
    %c0_i32_1 = arith.constant 0 : i32
    return %c0_i32, %c0_i32_0 : i32, i32
  }
  func.func @transform_2(%arg0: i32) -> (i32, i32) {
    %c0_i32 = arith.constant 0 : i32
    %c0_i32_0 = arith.constant 0 : i32
    %c0_i32_1 = arith.constant 0 : i32
    return %c0_i32, %c0_i32_0 : i32, i32
  }
  func.func @transform_3(%arg0: i32) -> (i32, i32) {
    %c0_i32 = arith.constant 0 : i32
    %c0_i32_0 = arith.constant 0 : i32
    %c0_i32_1 = arith.constant 0 : i32
    return %c0_i32, %c0_i32_0 : i32, i32
  }
  func.func @transform_4(%arg0: i32) -> (i32, i32, i32) {
    %c0_i32 = arith.constant 0 : i32
    %c0_i32_0 = arith.constant 0 : i32
    %c0_i32_1 = arith.constant 0 : i32
    %c0_i32_2 = arith.constant 0 : i32
    return %c0_i32, %c0_i32_0, %c0_i32_1 : i32, i32, i32
  }
  func.func @transform_5(%arg0: i32) -> (i32, i32, i32) {
    %c0_i32 = arith.constant 0 : i32
    %c0_i32_0 = arith.constant 0 : i32
    %c0_i32_1 = arith.constant 0 : i32
    return %arg0, %c0_i32, %c0_i32_0 : i32, i32, i32
  }
}

</mosaic_0001>

<bundles_post_ra>
// kernel: tpu_custom_call.1
= control target key start
LH: loop header
LB: loop body
LE: loop exit
PB: predicated region body
PF: predicated region fallthrough
CT: control target
= control target key end

     0   :  { %10 = vsyncpa [#allocation3], 0  ;;  %s1517_s0 = inlined_call_operand.hbm [shape: f32[2,8,32], index: 0, kind: input, shape index: {}]   ;;  %s1518_s1 = inlined_call_operand.hbm [shape: f32[1,32], index: 1, kind: input, shape index: {}]   ;;  %s1519_s2 = inlined_call_operand.hbm [shape: f32[32,96], index: 2, kind: input, shape index: {}]   ;;  %s1520_s3 = inlined_call_operand.hbm [shape: f32[32,32], index: 3, kind: input, shape index: {}]   ;;  %s1521_s4 = inlined_call_operand.hbm [shape: f32[4,8,8], index: 4, kind: input, shape index: {}]   ;;  %s1522_s5 = inlined_call_operand.hbm [shape: f32[2,8,32], index: 5, kind: output, shape index: {}]  }
   0x1   :  { %12 = vsyncpa [#allocation3 + $0x1], 0 }
   0x2   :  { %13 = vsyncpa [#allocation6], 0 }
   0x3   :  { %14 = vsyncpa [#allocation9], 0 }
   0x4   :  { %15 = vsyncpa [#allocation4], 0 }
   0x5   :  { %17 = vsyncpa [#allocation4 + $0x1], 0  ;;  %s1289_s18 = smov 0   ;;  %s1291_s19 = smov 0  }
   0x6   :  { %s1293_s20 = smov 0   ;;  %s1295_s21 = smov 0  }
   0x7 LB: > { %s176_s24 = sshll.u32 %s1518_s1, 4  ;;  %s1313_s25 = sadd.s32 4294967295, %s1236_s21   ;;  %s1236_s21 = sphi %s1295_s21, %s1534_s21   ;;  %s1232_s20 = sphi %s1293_s20, %s1533_s20   ;;  %s1228_s19 = sphi %s1291_s19, %s1532_s19   ;;  %s1224_s18 = sphi %s1289_s18, %s1531_s18   ;;  %s177_s24 = int_to_ptr.hbm [resolvable:$true] %s176_s24 }
   0x8   : > { %p854_p0 = scmp.ge.s32.totalorder %s1236_s21, 1  ;;  %p44_p1 = scmp.eq.s32.totalorder %s1313_s25, 0 }
   0x9   : > { %p164_p2 = scmp.lt.s32.totalorder %s1236_s21, 3  ;;  %s1238_s27 = smov [#allocation5]  }
   0xa   : > { %s178_s28 = sshll.u32 %s1238_s27, 4  ;;  %s201_s6 = sshll.u32 %s1520_s3, 4  ;;  %s179_s28 = int_to_ptr.vmem [resolvable:$true] %s178_s28  ;;  %s202_s6 = int_to_ptr.hbm [resolvable:$true] %s201_s6 }
   0xb   : > { %p1318_p3 = pnand %p854_p0, %p164_p2  ;;  %s187_s10 = sshll.u32 %s1519_s2, 4  ;;  %s188_s10 = int_to_ptr.hbm [resolvable:$true] %s187_s10 }
   0xc   : > { %s1239_s11 = smov [#allocation8]   ;;  %s1240_s13 = smov 128  }
   0xd   : > { %p907_p5 = pneg %p1318_p3  ;;  %s203_s12 = sshll.u32 %s1239_s11, 4  ;;  %s204_s12 = int_to_ptr.vmem [resolvable:$true] %s203_s12 }
   0xe   : > { %s1241_s14 = smov 8   ;;  %s215_s17 = sshll.u32 %s1521_s4, 4  ;;  %s216_s17 = int_to_ptr.hbm [resolvable:$true] %s215_s17 }
   0xf   : > { %p1330_p6 = pnand %p907_p5, %p44_p1  ;;  %s1242_s22 = smov [#allocation7]  }
  0x10   : > { %s189_s23 = sshll.u32 %s1242_s22, 4  ;;  %s1350_s29 = sadd.s32 1, %s1236_s21   ;;  %s190_s23 = int_to_ptr.vmem [resolvable:$true] %s189_s23 }
  0x11   : > { %910 = dma.hbm_to_vmem [thread:$0]  (!%p1330_p6), %s177_s24, 16, %s179_s28, [#allocation6]  }
  0x12   : > { %916 = dma.hbm_to_vmem [thread:$0]  (!%p1330_p6), %s202_s6, 512, %s204_s12, [#allocation9], %s1240_s13, %s1240_s13, %s1241_s14  }
  0x13   : > { %913 = dma.hbm_to_vmem [thread:$0]  (!%p1330_p6), %s188_s10, 512, %s190_s23, [#allocation6], %s1240_s13, %s1240_s13, %s1241_s14  }
  0x14   : > { %s1243_s24 = smov [#allocation10]   ;;  %s853_s28 = sadd.s32 4294967294, %s1236_s21  }
  0x15   : > { %s217_s27 = sshll.u32 %s1243_s24, 4  ;;  %s27_s30 = ssub.s32 %s1236_s21, %s1350_s29  ;;  %s218_s27 = int_to_ptr.vmem [resolvable:$true] %s217_s27 }
  0x16   : > { %919 = dma.hbm_to_vmem [thread:$0]  (!%p1330_p6), %s216_s17, 512, %s218_s27, [#allocation9], %s1240_s13, %s1240_s13, %s1241_s14  }
  0x17   : > { %s30_s6 = sadd.s32 1, %s1232_s20  ;;  %p28_p7 = scmp.eq.s32.totalorder %s27_s30, 0 }
  0x18   : > { %p37_p8 = scmp.ne.s32.totalorder %s1232_s20, %s1228_s19  ;;  %p38_p9 = scmp.eq.s32.totalorder %s1236_s21, 0 }
  0x19   : > { %p43_p10 = scmp.ne.s32.totalorder %s1228_s19, %s1224_s18  ;;  %p151_p13 = scmp.eq.s32.totalorder %s1313_s25, 1 }
  0x1a   : > { %s1361_s8 = scalar_select %p28_p7, %s1232_s20, %s30_s6  }
  0x1b   : > { %p1363_p11 = por %p38_p9, %p37_p8  ;;  %p1369_p12 = por %p44_p1, %p43_p10 }
  0x1c   : > { %p157_p0 = scmp.eq.s32.totalorder %s853_s28, 1  ;;  %p932_p2 = scmp.lt.s32.totalorder %s1236_s21, 2 }
  0x1d   : > { %s231_s10 = sand.u32 1, %s1232_s20   ;;  %p1376_p5 = por %p151_p13, %p37_p8 }
  0x1e   : > { %p1380_p6 = por %p157_p0, %p43_p10  ;;  %s860_s13 = sshll.u32 %s231_s10, 3 }
  0x1f   : > { %s861_s14 = sshll.u32 %s1236_s21, 3  ;;  %s235_s22 = scalar_lea.vmem [#allocation2], %s860_s13 }
  0x20   : > { %s239_s17 = scalar_lea.hbm %s1517_s0, %s861_s14  ;;  %s243_s23 = sshll.u32 %s235_s22, 4  ;;  %s244_s23 = int_to_ptr.vmem [resolvable:$true] %s243_s23 }
  0x21   : > { %s241_s24 = sshll.u32 %s239_s17, 4  ;;  %p1390_p7 = pnand %p932_p2, %p1363_p11  ;;  %s242_s24 = int_to_ptr.hbm [resolvable:$true] %s241_s24 }
  0x22   : > { %s232_s28 = scalar_lea.sflag [#allocation3], %s231_s10  ;;  %s1132_s30 = sshra.s32 %s242_s24, 4  ;;  %s1133_s30 = int_to_ptr.hbm [resolvable:$true] %s1132_s30 }
  0x23   : > { %s1134_s6 = scalar_lea.hbm %s1133_s30, 8  ;;  %p1136_p9 = pneg %p1390_p7 }
  0x24   : > { %p1135_p8 = scmp.ne.s32.totalorder %s1133_s30, %s1134_s6  ;;  %s1139_s15 = scalar_lea.hbm %s1517_s0, 16 }
  0x25   : > { %p1140_p11 = scmp.lt.s32.totalorder %s1133_s30, %s1517_s0  ;;  %p1141_p0 = scmp.lt.s32.totalorder %s1139_s15, %s1134_s6 }
  0x26   : > { %p1137_p10 = pnand %p1136_p9, %p1135_p8 }
  0x27   : > { %p1142_p2 = por %p1141_p0, %p1140_p11 }
  0x28   : > { %p1138_p13 = pneg %p1137_p10 }
  0x2a   : > { %p1143_p4 = pnand %p1142_p2, %p1138_p13 }
  0x2c   : > { %1146 = shalt.err (!%p1143_p4)
}
  0x2d   : > { %923 = dma.hbm_to_vmem [thread:$0]  (!%p1390_p7), %s242_s24, 128, %s244_s23, %s232_s28  }
  0x2e   : > { %252 = sbr.rel (%p1318_p3) target bundleno = 1243 (0x4db), region = 40  ;;  %s1407_s10 = sand.u32 (!%p1318_p3), 1, %s1228_s19  }
  0x2f   : > { %s863_s17 = sshll.u32 (!%p1318_p3), %s1407_s10, 3  ;;  %s255_s22 = scalar_lea.sflag (!%p1318_p3), [#allocation3], %s1407_s10 }
  0x30   : > { %s258_s30 = scalar_lea.vmem (!%p1318_p3), [#allocation2], %s863_s17 }
  0x33   : > { %1207 = dma.done.wait (%p1369_p12), %s255_s22, 128  }
  0x34   : > { %1209 = vsyncadd (%p1369_p12), %s255_s22, 4294967168 }
  0x35   : > { %1211 = dma.done.wait (%p44_p1), [#allocation6], 528  }
  0x36   : > { %1213 = vsyncadd (%p44_p1), [#allocation6], 4294966768 }
  0x37   : > { %1215 = dma.done.wait (%p44_p1), [#allocation9], 1024  }
  0x38   : > { %1217 = vsyncadd (%p44_p1), [#allocation9], 4294966272  ;;  %v1425_v0 = vld [vmem:[%s258_s30] sm:$0xff]  ;;  %vm308_vm0 = vcmask 261120   ;;  %v1244_v3 = vmov 32.0   ;;  %v337_v11 = vld [vmem:[#allocation7] sm:$0xff] }
  0x39   : > { %v307_v1 = vmul.f32 %v1425_v0, %v1425_v0  ;;  %992 = vrcp.f32 %v1244_v3  ;;  %v340_v7 = vld [vmem:[#allocation7 + $0x18] sm:$0xff]  ;;  %v339_v8 = vld [vmem:[#allocation7 + $0x10] sm:$0xff]  ;;  %v338_v9 = vld [vmem:[#allocation7 + $0x8] sm:$0xff]  ;;  %s1245_s26 = smov 80   ;;  %s1246_s7 = smov 88   ;;  %vm368_vm5 = vcmask 64512  }
  0x3a   : > { %356 = vmatpush.msra.mxu0 %v340_v7  ;;  %v991_v23 = vld [vmem:[#allocation5] ss:$0 sm:$0xff]  ;;  %s1247_s23 = smov 96   ;;  %s1248_s24 = smov 72   ;;  %v364_v35 = vld [vmem:[#allocation10] sm:$0xff]  ;;  %v444_v39 = vld [vmem:[#allocation10 + $0x8] sm:$0xff] }
  0x3b   : > { %v309_v2 = vsel %vm308_vm0, %v307_v1, 0.0  ;;  %s1249_s27 = smov 120   ;;  %s1250_s28 = smov 104   ;;  %v524_v41 = vld [vmem:[#allocation10 + $0x10] sm:$0xff]  ;;  %v604_v46 = vld [vmem:[#allocation10 + $0x18] sm:$0xff] }
  0x3c   : > { %310 = vadd.xlane.f32.xlu0 %v309_v2  ;;  %357 = vmatpush.msra.mxu0 %v339_v8  ;;  %s1251_s6 = smov 112   ;;  %s1252_s13 = smov 64  }
  0x3d   : > { %s1253_s14 = smov 40   ;;  %s1254_s15 = smov 56  }
  0x3e   : > { %358 = vmatpush.msra.mxu0 %v338_v9  ;;  %s1255_s16 = smov 48   ;;  %s1256_s9 = smov 8  }
  0x3f   : > { %v993_v4 = vpop.eup %992  ;;  %s1257_s22 = smov 24   ;;  %s1258_s30 = smov 16  }
  0x40   : > { %v313_v5 = vmul.f32 32.0, %v993_v4  ;;  %359 = vmatpush.msra.mxu0 %v337_v11  ;;  %vm317_vm1 = vweird.f32 %v993_v4 }
  0x42   : > { %v314_v6 = vsub.f32 1.0, %v313_v5 }
  0x44   : > { %v315_v10 = vmul.f32 %v993_v4, %v314_v6 }
  0x46   : > { %v316_v12 = vadd.f32 %v993_v4, %v315_v10 }
  0x48   : > { %v318_v13 = vsel %vm317_vm1, %v993_v4, %v316_v12 }
  0xaf   : > { %v311_v14 = vpop.xlane.xlu0 %310 }
  0xb0   : > { %v319_v15 = vmul.f32 %v318_v13, %v311_v14 }
  0xb2   : > { %v321_v16 = vadd.f32 1e-06, %v319_v15 }
  0xb4   : > { %994 = vrsqrt.f32 %v321_v16  ;;  %vm328_vm3 = vweird.f32 %v321_v16 }
  0xba   : > { %v995_v17 = vpop.eup %994 }
  0xbb   : > { %v323_v18 = vmul.f32 %v995_v17, %v321_v16  ;;  %vm329_vm2 = vweird.f32 %v995_v17 }
  0xbc   : > { %vm330_vm4 = vmor %vm328_vm3, %vm329_vm2 }
  0xbd   : > { %v324_v19 = vmul.f32 %v995_v17, %v323_v18 }
  0xbf   : > { %v325_v20 = vmul.f32 0.5, %v324_v19 }
  0xc1   : > { %v326_v21 = vsub.f32 1.5, %v325_v20 }
  0xc3   : > { %v327_v22 = vmul.f32 %v995_v17, %v326_v21 }
  0xc5   : > { %v331_v24 = vsel %vm330_vm4, %v995_v17, %v327_v22 }
  0xc6   : > { %v332_v25 = vmul.f32 %v331_v24, %v1425_v0 }
  0xc8   : > { %v336_v26 = vmul.f32 %v991_v23, %v332_v25 }
  0xca   : > { %869 = vmatmul.msk.f32.vlgmr.msra.gmra.mxu0 %vm308_vm0, %v336_v26 }
 0x147   : > { %v1432_v27 = vpop.f32.mrf.mxu0 }
 0x148   : > { %527 = vrot.lane.b32.xlu2 %v1432_v27, %s1245_s26  ;;  %447 = vrot.lane.b32.xlu1 %v1432_v27, %s1246_s7  ;;  %s884_s26 = sshll.u32 %s1313_s25, 3 }
 0x149   : > { %366 = vrot.lane.b32.xlu0 %v1432_v27, %s1247_s23 }
 0x150   : > { %607 = vrot.lane.b32.xlu2 %v1432_v27, %s1248_s24  ;;  %445 = vrot.lane.b32.xlu1 %v1432_v27, %s1249_s27  ;;  %s740_s24 = scalar_lea.hbm %s1522_s5, %s884_s26  ;;  %s305_s27 = scalar_lea.vmem [#allocation11], %s863_s17 }
 0x151   : > { %s1182_s17 = scalar_lea.hbm %s1522_s5, 16 }
 0x158   : > { %605 = vrot.lane.b32.xlu2 %v1432_v27, %s1250_s28  ;;  %525 = vrot.lane.b32.xlu1 %v1432_v27, %s1251_s6  ;;  %s742_s28 = sshll.u32 %s305_s27, 4  ;;  %s744_s6 = sshll.u32 %s740_s24, 4  ;;  %s743_s28 = int_to_ptr.vmem [resolvable:$true] %s742_s28  ;;  %s745_s6 = int_to_ptr.hbm [resolvable:$true] %s744_s6 }
 0x1a2   : > { %v528_v28 = vpop.permute.xlu2 %527 }
 0x1aa   : > { %v608_v29 = vpop.permute.xlu2 %607 }
 0x1ab   : > { %879 = vmatpush.xpose.msk.msrb.mxu0 %vm368_vm5, %v608_v29 }
 0x1b2   : > { %v606_v30 = vpop.permute.xlu2 %605 }
 0x1b3   : > { %880 = vmatmul.msk.f32.vlgmr.msrb.gmra.mxu0 %vm368_vm5, %v606_v30 }
 0x1ba   : > { %v448_v31 = vpop.permute.xlu1 %447 }
 0x1bb   : > { %v367_v32 = vpop.permute.xlu0 %366  ;;  %873 = vmatpush.xpose.msk.msra.mxu3 %vm368_vm5, %v448_v31 }
 0x1bc   : > { %870 = vmatpush.xpose.msk.msra.mxu1 %vm368_vm5, %v367_v32 }
 0x1bf   : > { %871 = vmatmul.msk.f32.vlgmr.msra.gmra.mxu1 %vm368_vm5, %v1432_v27 }
 0x1c0   : > { %876 = vmatpush.xpose.msk.msrb.mxu1 %vm368_vm5, %v528_v28 }
 0x1c2   : > { %v446_v33 = vpop.permute.xlu1 %445 }
 0x1c3   : > { %874 = vmatmul.msk.f32.vlgmr.msra.gmra.mxu3 %vm368_vm5, %v446_v33 }
 0x1ca   : > { %v526_v34 = vpop.permute.xlu1 %525 }
 0x1cb   : > { %877 = vmatmul.msk.f32.vlgmr.msrb.gmra.mxu1 %vm368_vm5, %v526_v34 }
 0x230   : > { %v630_v47 = vpop.f32.mrf.mxu0 }
 0x231   : > { %v631_v49 = vadd.f32 %v630_v47, %v604_v46 }
 0x233   : > { %v633_v50 = vsel %vm368_vm5, %v631_v49, -inf }
 0x23c   : > { %v390_v36 = vpop.f32.mrf.mxu1 }
 0x23d   : > { %v391_v37 = vadd.f32 %v390_v36, %v364_v35 }
 0x23f   : > { %v393_v38 = vsel %vm368_vm5, %v391_v37, -inf }
 0x240   : > { %394 = vmax.xlane.f32.xlu1 %v393_v38 }
 0x246   : > { %v470_v40 = vpop.f32.mrf.mxu3 }
 0x247   : > { %v471_v42 = vadd.f32 %v470_v40, %v444_v39 }
 0x248   : > { %v550_v43 = vpop.f32.mrf.mxu1 }
 0x249   : > { %v551_v44 = vadd.f32 %v550_v43, %v524_v41  ;;  %v473_v45 = vsel %vm368_vm5, %v471_v42, -inf }
 0x24a   : > { %474 = vmax.xlane.f32.xlu2 %v473_v45 }
 0x24b   : > { %v553_v48 = vsel %vm368_vm5, %v551_v44, -inf }
 0x24c   : > { %554 = vmax.xlane.f32.xlu0 %v553_v48 }
 0x252   : > { %634 = vmax.xlane.f32.xlu2 %v633_v50 }
 0x260   : > { %417 = vrot.lane.b32.xlu0 %v1432_v27, %s1252_s13  ;;  %s730_s13 = scalar_lea.sflag [#allocation4], %s1407_s10 }
 0x2b3   : > { %v395_v51 = vpop.xlane.xlu1 %394 }
 0x2b4   : > { %v396_v52 = vsub.f32 %v391_v37, %v395_v51 }
 0x2b6   : > { %v397_v53 = vmul.f32 1.442695, %v396_v52 }
 0x2b8   : > { %996 = vpow2.f32 %v397_v53 }
 0x2bd   : > { %v475_v54 = vpop.xlane.xlu2 %474 }
 0x2be   : > { %v997_v55 = vpop.eup %996  ;;  %v476_v56 = vsub.f32 %v471_v42, %v475_v54 }
 0x2bf   : > { %v555_v57 = vpop.xlane.xlu0 %554  ;;  %v399_v58 = vsel %vm368_vm5, %v997_v55, 0.0 }
 0x2c0   : > { %v477_v59 = vmul.f32 1.442695, %v476_v56  ;;  %v556_v60 = vsub.f32 %v551_v44, %v555_v57  ;;  %400 = vadd.xlane.f32.xlu1 %v399_v58 }
 0x2c2   : > { %998 = vpow2.f32 %v477_v59  ;;  %v557_v61 = vmul.f32 1.442695, %v556_v60 }
 0x2c4   : > { %1000 = vpow2.f32 %v557_v61 }
 0x2c5   : > { %v635_v62 = vpop.xlane.xlu2 %634 }
 0x2c6   : > { %v636_v63 = vsub.f32 %v631_v49, %v635_v62 }
 0x2c8   : > { %v1456_v1 = vpop.eup %998  ;;  %v637_v2 = vmul.f32 1.442695, %v636_v63 }
 0x2c9   : > { %v479_v3 = vsel %vm368_vm5, %v1456_v1, 0.0 }
 0x2ca   : > { %v1460_v4 = vpop.eup %1000  ;;  %1002 = vpow2.f32 %v637_v2  ;;  %480 = vadd.xlane.f32.xlu0 %v479_v3  ;;  %v702_v2 = vld [vmem:[#allocation8 + $0x10] sm:$0xff]  ;;  %v701_v3 = vld [vmem:[#allocation8 + $0x8] sm:$0xff] }
 0x2cb   : > { %v559_v5 = vsel %vm368_vm5, %v1460_v4, 0.0 }
 0x2cc   : > { %560 = vadd.xlane.f32.xlu2 %v559_v5 }
 0x2d0   : > { %v1464_v6 = vpop.eup %1002 }
 0x2d1   : > { %v639_v7 = vsel %vm368_vm5, %v1464_v6, 0.0 }
 0x2d2   : > { %v418_v8 = vpop.permute.xlu0 %417  ;;  %640 = vadd.xlane.f32.xlu1 %v639_v7 }
 0x2d3   : > { %438 = vmatpush.msra.mxu2 %v418_v8 }
 0x2de   : > { %657 = vrot.lane.b32.xlu0 %v1432_v27, %s1253_s14  ;;  %s1176_s14 = sshra.s32 %s745_s6, 4  ;;  %s1177_s14 = int_to_ptr.hbm [resolvable:$true] %s1176_s14 }
 0x2df   : > { %p1183_p12 = scmp.lt.s32.totalorder %s1177_s14, %s1522_s5 }
 0x2e4   : > { %497 = vrot.lane.b32.xlu2 %v1432_v27, %s1254_s15  ;;  %s1178_s15 = scalar_lea.hbm %s1177_s14, 8 }
 0x2e5   : > { %p1179_p1 = scmp.ne.s32.totalorder %s1177_s14, %s1178_s15  ;;  %p1184_p7 = scmp.lt.s32.totalorder %s1182_s17, %s1178_s15 }
 0x2e7   : > { %p1180_p3 = pnand %p1179_p1, %p1376_p5  ;;  %p1185_p8 = por %p1184_p7, %p1183_p12 }
 0x2e9   : > { %p1181_p4 = pneg %p1180_p3 }
 0x2eb   : > { %577 = vrot.lane.b32.xlu1 %v1432_v27, %s1255_s16  ;;  %p1186_p9 = pnand %p1185_p8, %p1181_p4 }
 0x333   : > { %v401_v9 = vpop.xlane.xlu1 %400 }
 0x334   : > { %1004 = vrcp.f32 %v401_v9  ;;  %v413_v14 = vand.u32 2147483648, %v401_v9  ;;  %v411_v17 = vand.u32 2147483647, %v401_v9  ;;  %vm407_vm7 = vweird.f32 %v401_v9 }
 0x336   : > { %v414_v19 = vor.u32 1.1754944e-38, %v413_v14  ;;  %vm412_vm9 = vcmp.eq.f32.partialorder %v411_v17, 8.507059e+37 }
 0x33a   : > { %v1005_v10 = vpop.eup %1004 }
 0x33b   : > { %v403_v11 = vmul.f32 %v1005_v10, %v401_v9  ;;  %vm408_vm6 = vweird.f32 %v1005_v10 }
 0x33c   : > { %vm409_vm8 = vmor %vm407_vm7, %vm408_vm6 }
 0x33d   : > { %v404_v12 = vsub.f32 1.0, %v403_v11  ;;  %v481_v13 = vpop.xlane.xlu0 %480 }
 0x33e   : > { %1006 = vrcp.f32 %v481_v13  ;;  %v493_v30 = vand.u32 2147483648, %v481_v13  ;;  %v491_v32 = vand.u32 2147483647, %v481_v13  ;;  %vm487_vm11 = vweird.f32 %v481_v13 }
 0x33f   : > { %v405_v15 = vmul.f32 %v1005_v10, %v404_v12  ;;  %v561_v16 = vpop.xlane.xlu2 %560 }
 0x340   : > { %1008 = vrcp.f32 %v561_v16  ;;  %v494_v36 = vor.u32 1.1754944e-38, %v493_v30  ;;  %vm492_vm13 = vcmp.eq.f32.partialorder %v491_v32, 8.507059e+37  ;;  %v573_v49 = vand.u32 2147483648, %v561_v16 }
 0x341   : > { %v406_v18 = vadd.f32 %v1005_v10, %v405_v15  ;;  %vm567_vm3 = vweird.f32 %v561_v16  ;;  %v571_v51 = vand.u32 2147483647, %v561_v16 }
 0x342   : > { %v574_v56 = vor.u32 1.1754944e-38, %v573_v49 }
 0x343   : > { %v410_v20 = vsel %vm409_vm8, %v1005_v10, %v406_v18  ;;  %vm572_vm7 = vcmp.eq.f32.partialorder %v571_v51, 8.507059e+37  ;;  %vm696_vm8 = vcmask 130048  }
 0x344   : > { %v1007_v21 = vpop.eup %1006  ;;  %v415_v22 = vsel %vm412_vm9, %v414_v19, %v410_v20  ;;  %vm698_vm9 = vcmask 195584  }
 0x345   : > { %v483_v23 = vmul.f32 %v1007_v21, %v481_v13  ;;  %v641_v24 = vpop.xlane.xlu1 %640  ;;  %v416_v25 = vmul.f32 %v997_v55, %v415_v22  ;;  %vm488_vm10 = vweird.f32 %v1007_v21 }
 0x346   : > { %v1009_v26 = vpop.eup %1008  ;;  %1010 = vrcp.f32 %v641_v24  ;;  %vm489_vm12 = vmor %vm487_vm11, %vm488_vm10  ;;  %v653_v43 = vand.u32 2147483648, %v641_v24  ;;  %v651_v46 = vand.u32 2147483647, %v641_v24  ;;  %vm647_vm1 = vweird.f32 %v641_v24 }
 0x347   : > { %v484_v27 = vsub.f32 1.0, %v483_v23  ;;  %v563_v28 = vmul.f32 %v1009_v26, %v561_v16  ;;  %872 = vmatmul.msk.f32.vlgmr.msra.gmra.mxu2 %vm368_vm5, %v416_v25  ;;  %v498_v29 = vpop.permute.xlu2 %497  ;;  %vm568_vm15 = vweird.f32 %v1009_v26 }
 0x348   : > { %518 = vmatpush.msrb.mxu2 %v498_v29  ;;  %v654_v50 = vor.u32 1.1754944e-38, %v653_v43  ;;  %vm652_vm4 = vcmp.eq.f32.partialorder %v651_v46, 8.507059e+37  ;;  %vm569_vm6 = vmor %vm567_vm3, %vm568_vm15 }
 0x349   : > { %v485_v31 = vmul.f32 %v1007_v21, %v484_v27  ;;  %v564_v34 = vsub.f32 1.0, %v563_v28 }
 0x34b   : > { %v486_v33 = vadd.f32 %v1007_v21, %v485_v31  ;;  %v565_v40 = vmul.f32 %v1009_v26, %v564_v34 }
 0x34c   : > { %v1011_v35 = vpop.eup %1010 }
 0x34d   : > { %v643_v37 = vmul.f32 %v1011_v35, %v641_v24  ;;  %v490_v38 = vsel %vm489_vm12, %v1007_v21, %v486_v33  ;;  %vm648_vm14 = vweird.f32 %v1011_v35  ;;  %v566_v47 = vadd.f32 %v1009_v26, %v565_v40 }
 0x34e   : > { %v495_v39 = vsel %vm492_vm13, %v494_v36, %v490_v38  ;;  %vm649_vm2 = vmor %vm647_vm1, %vm648_vm14 }
 0x34f   : > { %v644_v41 = vsub.f32 1.0, %v643_v37  ;;  %v496_v42 = vmul.f32 %v1456_v1, %v495_v39  ;;  %v570_v55 = vsel %vm569_vm6, %v1009_v26, %v566_v47  ;;  %v703_v1 = vld [vmem:[#allocation8 + $0x18] sm:$0xff] }
 0x350   : > { %v658_v44 = vpop.permute.xlu0 %657  ;;  %v575_v57 = vsel %vm572_vm7, %v574_v56, %v570_v55  ;;  %719 = vmatpush.msra.mxu1 %v703_v1 }
 0x351   : > { %v645_v45 = vmul.f32 %v1011_v35, %v644_v41  ;;  %875 = vmatmul.msk.f32.vlgmr.msrb.gmra.mxu2 %vm368_vm5, %v496_v42  ;;  %v576_v59 = vmul.f32 %v1460_v4, %v575_v57  ;;  %v700_v4 = vld [vmem:[#allocation8] sm:$0xff] }
 0x352   : > { %678 = vmatpush.msra.mxu2 %v658_v44  ;;  %720 = vmatpush.msra.mxu1 %v702_v2 }
 0x353   : > { %v646_v48 = vadd.f32 %v1011_v35, %v645_v45 }
 0x354   : > { %721 = vmatpush.msra.mxu1 %v701_v3 }
 0x355   : > { %v650_v52 = vsel %vm649_vm2, %v1011_v35, %v646_v48 }
 0x356   : > { %v655_v53 = vsel %vm652_vm4, %v654_v50, %v650_v52  ;;  %722 = vmatpush.msra.mxu1 %v700_v4 }
 0x357   : > { %v656_v54 = vmul.f32 %v1464_v6, %v655_v53 }
 0x359   : > { %881 = vmatmul.msk.f32.vlgmr.msra.gmra.mxu2 %vm368_vm5, %v656_v54 }
 0x35d   : > { %v578_v58 = vpop.permute.xlu1 %577 }
 0x35e   : > { %598 = vmatpush.msrb.mxu3 %v578_v58 }
 0x35f   : > { %878 = vmatmul.msk.f32.vlgmr.msrb.gmra.mxu3 %vm368_vm5, %v576_v59 }
 0x3ca   : > { %v440_v60 = vpop.f32.mrf.mxu2 }
 0x3d4   : > { %v520_v61 = vpop.f32.mrf.mxu2 }
 0x3d5   : > { %684 = vrot.lane.b32.xlu2 %v520_v61, %s1256_s9 }
 0x3dc   : > { %v680_v62 = vpop.f32.mrf.mxu2 }
 0x3dd   : > { %692 = vrot.lane.b32.xlu1 %v680_v62, %s1257_s22 }
 0x3e2   : > { %v600_v63 = vpop.f32.mrf.mxu3 }
 0x3e3   : > { %688 = vrot.lane.b32.xlu0 %v600_v63, %s1258_s30 }
 0x42f   : > { %v685_v5 = vpop.permute.xlu2 %684 }
 0x430   : > { %v695_v6 = vsel %vm368_vm5, %v440_v60, %v685_v5 }
 0x44f   : > { %v693_v8 = vpop.permute.xlu1 %692 }
 0x455   : > { %v689_v7 = vpop.permute.xlu0 %688 }
 0x456   : > { %v697_v9 = vsel %vm696_vm8, %v695_v6, %v689_v7 }
 0x457   : > { %v699_v10 = vsel %vm698_vm9, %v697_v9, %v693_v8 }
 0x458   : > { %882 = vmatmul.msk.f32.vlgmr.msra.gmra.mxu1 %vm308_vm0, %v699_v10 }
 0x4d5   : > { %v724_v11 = vpop.f32.mrf.mxu1 }
 0x4d6   : > { %v727_v12 = vadd.f32 %v724_v11, %v1425_v0 }
 0x4d8   : > { %728 = vst.msk [vmem:[%s305_s27] sm:$0xff] %vm308_vm0, %v727_v12 }
 0x4d9   : > { %1189 = shalt.err (!%p1186_p9)
}
 0x4da   : > { %905 = dma.vmem_to_hbm [thread:$0]  (%p1376_p5), %s743_s28, 128, %s745_s6, %s730_s13  }
 0x4db PF: > { %s756_s10 = sand.u32 1, %s1224_s18   ;;  %p1530_p10 = scmp.ge.s32.totalorder %s1236_s21, 2 }
 0x4dc   : > { %s757_s30 = scalar_lea.sflag [#allocation4], %s756_s10 }
 0x4dd   : > { %p925_p13 = pnand %p1530_p10, %p1380_p6 }
 0x4df   : > { %p926_p11 = pneg %p925_p13 }
 0x4e1   : > { %1219 = dma.done.wait (%p926_p11), %s757_s30, 128  }
 0x4e2   : > { %1221 = vsyncadd (%p926_p11), %s757_s30, 4294967168  ;;  %p20_p0 = scmp.ge.s32.totalorder %s1350_s29, 4   ;;  %s1531_s18 = smov %s1228_s19 }
 0x4e3   : > { %s1532_s19 = smov %s1232_s20  ;;  %s1533_s20 = smov %s1361_s8 }
 0x4e4   : > { %s1534_s21 = smov %s1350_s29  ;;  %22 = sbr.rel (!%p20_p0) target bundleno = 7 (0x7), region = 104 }
 0x4e9   :  { %763 = vsyncpa [#allocation3], 1 }
 0x4ea   :  { %765 = vsyncpa [#allocation3 + $0x1], 1 }
 0x4eb   :  { %766 = vsyncpa [#allocation6], 1 }
 0x4ec   :  { %767 = vsyncpa [#allocation9], 1 }
 0x4ed   :  { %768 = vsyncpa [#allocation4], 1 }
 0x4ee   :  { %770 = vsyncpa [#allocation4 + $0x1], 1 }

</bundles_post_ra>
